<compile_context>
chip_gen: v6e
topology: v6e:2x2x1
jax: 0.10.0
libtpu: 0.0.40
codegen_flags: <defaults>
</compile_context>

<pallas_src>
import jax
import jax.numpy as jnp
from jax import lax
from jax.experimental import pallas as pl
from jax.experimental.pallas import tpu as pltpu


def cnn_kernel(x_ref, w_ref, b_ref, o_ref):
    # x_ref: (TB, C_in*L)        input slab, batch on the sublane axis (natural layout)
    # w_ref: (T*C_out, C_in*L)   banded conv weight (resident, constant index_map)
    # b_ref: (C_out, 1)
    # o_ref: (C_out, TB)         lane-dense output
    c_out = b_ref.shape[0]
    t_len = w_ref.shape[0] // c_out
    tb = x_ref.shape[0]

    # Conv1d for all T output positions, all C_out channels, all TB samples:
    # a single MXU matmul, contracting on x's feature axis (trans-B).
    conv = lax.dot_general(
        w_ref[...], x_ref[...],
        dimension_numbers=(((1,), (1,)), ((), ())),
        preferred_element_type=jnp.float32)                   # (T*C_out, TB)
    conv = conv.reshape(t_len, c_out, tb)                     # (T, C_out, TB)

    # Full-window MaxPool1d over T, then bias + ReLU (commutes with the max).
    pooled = jnp.max(conv, axis=0)                            # (C_out, TB)
    o_ref[...] = jnp.maximum(pooled + b_ref[...], 0.0)


def _banded_weight(weight, length):
    """(C_out, C_in, K) -> (T*C_out, C_in*L) banded (Toeplitz) conv matrix.

    Row t*C_out + o, column c*L + l holds weight[o, c, l - t] inside the band,
    zero elsewhere, so W_big @ x_flat.T computes every conv output position at once.
    Pad width L-K >= max shift, so no nonzero tap ever wraps around.
    """
    c_out, c_in, k = weight.shape
    t = length - k + 1
    w_pad = jnp.pad(weight.astype(jnp.float32),
                    ((0, 0), (0, 0), (0, length - k)))         # (C_out, C_in, L)
    rows = [jnp.roll(w_pad, shift, axis=-1).reshape(c_out, c_in * length)
            for shift in range(t)]
    return jnp.concatenate(rows, axis=0)                       # (T*C_out, C_in*L)


def prepare_cnn_params(weight, bias, length):
    """Build the per-weight-set kernel operands once (do NOT rebuild per batch)."""
    c_out = weight.shape[0]
    w_big = _banded_weight(weight, length)                     # (T*C_out, C_in*L)
    bias2d = bias.astype(jnp.float32).reshape(c_out, 1)        # (C_out, 1)
    return w_big, bias2d


def cnn_forward(x, w_big, bias2d, *, batch_tile=4096):
    """x: (B, C_in, L); w_big: (T*C_out, C_in*L); bias2d: (C_out, 1).
    Returns (B, C_out, 1) matching the PyTorch module."""
    b_sz, c_in, length = x.shape
    c_out = bias2d.shape[0]
    t = w_big.shape[0] // c_out
    assert w_big.shape[1] == c_in * length
    k = length - t + 1
    pool = 21 - k + 1
    assert t == pool, "MaxPool1d window (21-k+1) must equal conv output length (L must be 21)"

    # Batch tile: multiple of 128 (lane-dense stores), capped so grid has >=2
    # steps whenever B allows it (v7x: 2 TensorCores share the "parallel" axis).
    half = pl.cdiv(b_sz, 2)
    tb = max(128, min(batch_tile, pl.cdiv(half, 128) * 128))
    grid = (pl.cdiv(b_sz, tb),)

    # Free reshape only — no transpose / pad / extra HBM copy of x.
    x2 = x.astype(jnp.float32).reshape(b_sz, c_in * length)    # (B, C_in*L)

    flops = 2 * b_sz * (t * c_out) * (c_in * length)           # issued matmul work
    bytes_accessed = 4 * (b_sz * c_in * length                 # x read
                          + t * c_out * c_in * length          # w_big read
                          + b_sz * c_out)                      # output write

    out = pl.pallas_call(
        cnn_kernel,
        out_shape=jax.ShapeDtypeStruct((c_out, b_sz), jnp.float32),
        grid=grid,
        in_specs=[
            pl.BlockSpec((tb, c_in * length), lambda b: (b, 0)),
            pl.BlockSpec((t * c_out, c_in * length), lambda b: (0, 0)),
            pl.BlockSpec((c_out, 1), lambda b: (0, 0)),
        ],
        out_specs=pl.BlockSpec((c_out, tb), lambda b: (0, b)),
        compiler_params=pltpu.CompilerParams(
            dimension_semantics=("parallel",)),
        cost_estimate=pl.CostEstimate(
            flops=flops, transcendentals=0, bytes_accessed=bytes_accessed),
    )(x2, w_big, bias2d)

    # (C_out, B) -> PyTorch (B, C_out, 1). Tiny tensor; cheap layout plumbing.
    return jnp.transpose(out)[:, :, None]


def _reference(x, weight, bias):
    # Pure-JAX reference of Conv1d -> ReLU -> MaxPool1d(full window).
    c_out, c_in, k = weight.shape
    t = x.shape[-1] - k + 1
    cols = jnp.stack([x[:, :, j:j + t] for j in range(k)], axis=-1)  # (B, C_in, T, K)
    conv = jnp.einsum("bctk,ock->bot", cols, weight) + bias[None, :, None]
    return jnp.max(jax.nn.relu(conv), axis=-1, keepdims=True)


if __name__ == "__main__":
    B, in_ch, out_ch, k = 2, 4, 8, 5
    L = 21  # implied by MaxPool1d(21 - k + 1)

    key = jax.random.PRNGKey(0)
    kx, kw, kb = jax.random.split(key, 3)

    # Deterministic init mimicking PyTorch Conv1d default: U(-bound, bound),
    # bound = 1/sqrt(in_ch * k).
    bound = 1.0 / (in_ch * k) ** 0.5
    x = jax.random.normal(kx, (B, in_ch, L), dtype=jnp.float32)
    weight = jax.random.uniform(kw, (out_ch, in_ch, k), jnp.float32, -bound, bound)
    bias = jax.random.uniform(kb, (out_ch,), jnp.float32, -bound, bound)

    # Per-weight-set params built once, reused across forward calls.
    w_big, bias2d = prepare_cnn_params(weight, bias, L)

    out = cnn_forward(x, w_big, bias2d)
    out = jax.block_until_ready(out)

    ref = _reference(x, weight, bias)
    assert out.shape == (B, out_ch, 1), out.shape
    assert jnp.allclose(out, ref, atol=1e-4, rtol=1e-4), "mismatch vs reference"

    print("KERNEL_OK")
</pallas_src>

<mosaic_0001>
module attributes {stable_mosaic.version = 11 : i64} {
  func.func @cnn_kernel(%arg0: i32, %arg1: memref<128x84xf32, #tpu.memory_space<vmem>>, %arg2: memref<136x84xf32, #tpu.memory_space<vmem>>, %arg3: memref<8x1xf32, #tpu.memory_space<vmem>>, %arg4: memref<8x128xf32, #tpu.memory_space<vmem>>) attributes {dimension_semantics = [#tpu.dimension_semantics<parallel>], iteration_bounds = array<i64: 1>, scalar_prefetch = 0 : i64, scratch_operands = 0 : i64, tpu.core_type = #tpu.core_type<tc>, window_params = [{transform_indices = @transform_0, window_bounds = array<i64: 128, 84>}, {pipeline_mode = #tpu.pipeline_mode<synchronous>, transform_indices = @transform_1, window_bounds = array<i64: 136, 84>}, {pipeline_mode = #tpu.pipeline_mode<synchronous>, transform_indices = @transform_2, window_bounds = array<i64: 8, 1>}, {transform_indices = @transform_3, window_bounds = array<i64: 8, 128>}]} {
    %c0 = arith.constant 0 : index
    %c0_0 = arith.constant 0 : index
    %0 = vector.load %arg2[%c0, %c0_0] : memref<136x84xf32, #tpu.memory_space<vmem>>, vector<136x84xf32>
    %c0_1 = arith.constant 0 : index
    %c0_2 = arith.constant 0 : index
    %1 = vector.load %arg1[%c0_1, %c0_2] : memref<128x84xf32, #tpu.memory_space<vmem>>, vector<128x84xf32>
    %cst = arith.constant dense<0.000000e+00> : vector<136x128xf32>
    %2 = tpu.matmul %0, %1, %cst {dimension_numbers = #tpu.dot_dimension_numbers<[1], [1], [0], [0], [0, 0, 1, 0], [], []>} : vector<136x84xf32>, vector<128x84xf32>, vector<136x128xf32> -> vector<136x128xf32>
    %3 = vector.shape_cast %2 : vector<136x128xf32> to vector<17x8x128xf32>
    %cst_3 = arith.constant dense<0xFF800000> : vector<8x128xf32>
    %4 = vector.multi_reduction <maximumf>, %3, %cst_3 [0] : vector<17x8x128xf32> to vector<8x128xf32>
    %c0_4 = arith.constant 0 : index
    %c0_5 = arith.constant 0 : index
    %5 = vector.load %arg3[%c0_4, %c0_5] : memref<8x1xf32, #tpu.memory_space<vmem>>, vector<8x1xf32>
    %6 = vector.broadcast %5 : vector<8x1xf32> to vector<8x128xf32>
    %7 = arith.addf %4, %6 : vector<8x128xf32>
    %cst_6 = arith.constant 0.000000e+00 : f32
    %8 = vector.broadcast %cst_6 : f32 to vector<8x128xf32>
    %9 = arith.maximumf %7, %8 : vector<8x128xf32>
    %c0_7 = arith.constant 0 : index
    %c0_8 = arith.constant 0 : index
    %10 = vector.load %arg4[%c0_7, %c0_8] : memref<8x128xf32, #tpu.memory_space<vmem>>, vector<8x128xf32>
    tpu.vector_store %arg4[%c0_7, %c0_8], %9 {strides = array<i32>} : memref<8x128xf32, #tpu.memory_space<vmem>>, vector<8x128xf32>,
    return
  }
  func.func @transform_0(%arg0: i32) -> (i32, i32) {
    %c0_i32 = arith.constant 0 : i32
    %c0_i32_0 = arith.constant 0 : i32
    return %arg0, %c0_i32 : i32, i32
  }
  func.func @transform_1(%arg0: i32) -> (i32, i32) {
    %c0_i32 = arith.constant 0 : i32
    %c0_i32_0 = arith.constant 0 : i32
    %c0_i32_1 = arith.constant 0 : i32
    return %c0_i32, %c0_i32_0 : i32, i32
  }
  func.func @transform_2(%arg0: i32) -> (i32, i32) {
    %c0_i32 = arith.constant 0 : i32
    %c0_i32_0 = arith.constant 0 : i32
    %c0_i32_1 = arith.constant 0 : i32
    return %c0_i32, %c0_i32_0 : i32, i32
  }
  func.func @transform_3(%arg0: i32) -> (i32, i32) {
    %c0_i32 = arith.constant 0 : i32
    %c0_i32_0 = arith.constant 0 : i32
    return %c0_i32, %arg0 : i32, i32
  }
}

</mosaic_0001>

<bundles_post_ra>
// kernel: tpu_custom_call.1
= control target key start
LH: loop header
LB: loop body
LE: loop exit
PB: predicated region body
PF: predicated region fallthrough
CT: control target
= control target key end

     0   :  { %8 = vsyncpa [#allocation3], 0  ;;  %s551_s12 = smov [#allocation2]   ;;  %s749_s0 = inlined_call_operand.vmem [shape: f32[2,84], index: 0, kind: input, shape index: {}]   ;;  %s750_s1 = inlined_call_operand.hbm [shape: f32[136,84], index: 1, kind: input, shape index: {}]   ;;  %s751_s2 = inlined_call_operand.vmem [shape: f32[8,1], index: 2, kind: input, shape index: {}]   ;;  %s752_s3 = inlined_call_operand.vmem [shape: f32[8,2], index: 3, kind: output, shape index: {}]  }
   0x1   :  { %s16_s13 = sshll.u32 %s551_s12, 4  ;;  %s17_s13 = int_to_ptr.vmem [resolvable:$true] %s16_s13 }
   0x2   :  { %s537_s14 = scalar_lea.vmem %s17_s13, 2176  ;;  %p542_p1 = scmp.lt.s32.totalorder %s17_s13, %s17_s13 }
   0x3   :  { %p538_p0 = scmp.ne.s32.totalorder %s17_s13, %s537_s14  ;;  %p543_p2 = scmp.lt.s32.totalorder %s537_s14, %s537_s14 }
   0x5   :  { %p544_p3 = por %p543_p2, %p542_p1 }
   0x7   :  { %p545_p4 = pnand %p544_p3, %p538_p0 }
   0x9   :  { %548 = shalt.err (!%p545_p4)
}
   0xa   :  { %s552_s15 = smov 128   ;;  %s553_s16 = smov 8  }
   0xb   :  { %22 = dma.hbm_to_vmem [thread:$0]  %s750_s1, 2176, %s17_s13, [#allocation3], %s552_s15, %s552_s15, %s553_s16  }
   0xc   :  { %549 = dma.done.wait [#allocation3], 2176  }
   0xd   :  { %550 = vsyncadd [#allocation3], 4294965120  ;;  %v554_v0 = vmov 0.0   ;;  %vm555_vm0 = vmmov 0   ;;  %v556_v1 = vmov 0   ;;  %vm61_vm1 = vcmask 687104  }
   0xe   :  { %407 = vmatprep.subr.mxu0 %v554_v0  ;;  %490 = vmatprep.subr.mxu1 %v554_v0  ;;  %v60_v2 = vld [vmem:[%s749_s0 + $0x78] sm:$0xff]  ;;  %v59_v3 = vld [vmem:[%s749_s0 + $0x70] sm:$0xff]  ;;  %v58_v4 = vld [vmem:[%s749_s0 + $0x68] sm:$0xff] }
   0xf   :  { %439 = vmatprep.mubr.msk.f32.mxu0 %vm555_vm0, %v554_v0  ;;  %466 = vmatprep.mubr.msk.f32.mxu1 %vm555_vm0, %v554_v0  ;;  %v57_v5 = vld [vmem:[%s749_s0 + $0x60] sm:$0xff]  ;;  %v56_v7 = vld [vmem:[%s749_s0 + $0x58] sm:$0xff]  ;;  %v55_v8 = vld [vmem:[%s749_s0 + $0x50] sm:$0xff] }
  0x10   :  { %528 = vset.pattern.permute.xlu0 %v556_v1  ;;  %408 = vmatpush3.xpose.msk.msra.mxu0 %vm61_vm1, %v60_v2  ;;  %v327_v6 = vld [vmem:[%s751_s2] sm:$0xff]  ;;  %v54_v9 = vld [vmem:[%s749_s0 + $0x48] sm:$0xff]  ;;  %v52_v11 = vld [vmem:[%s749_s0 + $0x38] sm:$0xff] }
  0x11   :  { %506 = vmatpush3.xpose.msk.msra.mxu1 %vm61_vm1, %v60_v2  ;;  %409 = vmatprep.subr.mxu0 %v554_v0  ;;  %v53_v10 = vld [vmem:[%s749_s0 + $0x40] sm:$0xff]  ;;  %v51_v12 = vld [vmem:[%s749_s0 + $0x30] sm:$0xff]  ;;  %v50_v13 = vld [vmem:[%s749_s0 + $0x28] sm:$0xff] }
  0x12   :  { %491 = vmatprep.subr.mxu1 %v554_v0  ;;  %330 = vperm.xlu0 %528, %v327_v6   ;;  %v49_v14 = vld [vmem:[%s749_s0 + $0x20] sm:$0xff]  ;;  %v48_v15 = vld [vmem:[%s749_s0 + $0x18] sm:$0xff]  ;;  %v47_v16 = vld [vmem:[%s749_s0 + $0x10] sm:$0xff] }
  0x13   :  { %v46_v17 = vld [vmem:[%s749_s0 + $0x8] sm:$0xff]  ;;  %v45_v18 = vld [vmem:[%s749_s0] sm:$0xff]  ;;  %v38_v22 = vld [vmem:[#allocation2 + $0x50] sm:$0xff] }
  0x14   :  { %410 = vmatpush3.xpose.msk.msra.mxu0 %vm61_vm1, %v59_v3  ;;  %v28_v19 = vld [vmem:[#allocation2] sm:$0xff]  ;;  %v37_v20 = vld [vmem:[#allocation2 + $0x48] sm:$0xff]  ;;  %v30_v23 = vld [vmem:[#allocation2 + $0x10] sm:$0xff] }
  0x15   :  { %507 = vmatpush3.xpose.msk.msra.mxu1 %vm61_vm1, %v59_v3  ;;  %411 = vmatprep.subr.mxu0 %v554_v0  ;;  %v29_v21 = vld [vmem:[#allocation2 + $0x8] sm:$0xff]  ;;  %v39_v24 = vld [vmem:[#allocation2 + $0x58] sm:$0xff]  ;;  %v40_v26 = vld [vmem:[#allocation2 + $0x60] sm:$0xff] }
  0x16   :  { %492 = vmatprep.subr.mxu1 %v554_v0  ;;  %v31_v25 = vld [vmem:[#allocation2 + $0x18] sm:$0xff]  ;;  %v32_v27 = vld [vmem:[#allocation2 + $0x20] sm:$0xff]  ;;  %v41_v28 = vld [vmem:[#allocation2 + $0x68] sm:$0xff] }
  0x17   :  { %v33_v29 = vld [vmem:[#allocation2 + $0x28] sm:$0xff]  ;;  %v42_v30 = vld [vmem:[#allocation2 + $0x70] sm:$0xff]  ;;  %v43_v32 = vld [vmem:[#allocation2 + $0x78] sm:$0xff] }
  0x18   :  { %412 = vmatpush3.xpose.msk.msra.mxu0 %vm61_vm1, %v58_v4  ;;  %v34_v31 = vld [vmem:[#allocation2 + $0x30] sm:$0xff]  ;;  %v35_v33 = vld [vmem:[#allocation2 + $0x38] sm:$0xff]  ;;  %v44_v34 = vld [vmem:[#allocation2 + $0x80] sm:$0xff] }
  0x19   :  { %508 = vmatpush3.xpose.msk.msra.mxu1 %vm61_vm1, %v58_v4  ;;  %413 = vmatprep.subr.mxu0 %v554_v0  ;;  %v36_v35 = vld [vmem:[#allocation2 + $0x40] sm:$0xff] }
  0x1a   :  { %493 = vmatprep.subr.mxu1 %v554_v0 }
  0x1c   :  { %414 = vmatpush3.xpose.msk.msra.mxu0 %vm61_vm1, %v57_v5 }
  0x1d   :  { %509 = vmatpush3.xpose.msk.msra.mxu1 %vm61_vm1, %v57_v5  ;;  %415 = vmatprep.subr.mxu0 %v554_v0 }
  0x1e   :  { %494 = vmatprep.subr.mxu1 %v554_v0 }
  0x20   :  { %416 = vmatpush3.xpose.msk.msra.mxu0 %vm61_vm1, %v56_v7 }
  0x21   :  { %510 = vmatpush3.xpose.msk.msra.mxu1 %vm61_vm1, %v56_v7  ;;  %417 = vmatprep.subr.mxu0 %v554_v0 }
  0x22   :  { %495 = vmatprep.subr.mxu1 %v554_v0 }
  0x24   :  { %418 = vmatpush3.xpose.msk.msra.mxu0 %vm61_vm1, %v55_v8 }
  0x25   :  { %511 = vmatpush3.xpose.msk.msra.mxu1 %vm61_vm1, %v55_v8  ;;  %419 = vmatprep.subr.mxu0 %v554_v0 }
  0x26   :  { %496 = vmatprep.subr.mxu1 %v554_v0 }
  0x28   :  { %420 = vmatpush3.xpose.msk.msra.mxu0 %vm61_vm1, %v54_v9 }
  0x29   :  { %512 = vmatpush3.xpose.msk.msra.mxu1 %vm61_vm1, %v54_v9  ;;  %421 = vmatprep.subr.mxu0 %v554_v0 }
  0x2a   :  { %497 = vmatprep.subr.mxu1 %v554_v0 }
  0x2c   :  { %422 = vmatpush3.xpose.msk.msra.mxu0 %vm61_vm1, %v53_v10 }
  0x2d   :  { %513 = vmatpush3.xpose.msk.msra.mxu1 %vm61_vm1, %v53_v10  ;;  %423 = vmatprep.subr.mxu0 %v554_v0 }
  0x2e   :  { %498 = vmatprep.subr.mxu1 %v554_v0 }
  0x30   :  { %424 = vmatpush3.xpose.msk.msra.mxu0 %vm61_vm1, %v52_v11 }
  0x31   :  { %514 = vmatpush3.xpose.msk.msra.mxu1 %vm61_vm1, %v52_v11  ;;  %425 = vmatprep.subr.mxu0 %v554_v0 }
  0x32   :  { %499 = vmatprep.subr.mxu1 %v554_v0 }
  0x34   :  { %426 = vmatpush3.xpose.msk.msra.mxu0 %vm61_vm1, %v51_v12 }
  0x35   :  { %515 = vmatpush3.xpose.msk.msra.mxu1 %vm61_vm1, %v51_v12  ;;  %427 = vmatprep.subr.mxu0 %v554_v0 }
  0x36   :  { %500 = vmatprep.subr.mxu1 %v554_v0 }
  0x38   :  { %428 = vmatpush3.xpose.msk.msra.mxu0 %vm61_vm1, %v50_v13 }
  0x39   :  { %516 = vmatpush3.xpose.msk.msra.mxu1 %vm61_vm1, %v50_v13  ;;  %429 = vmatprep.subr.mxu0 %v554_v0 }
  0x3a   :  { %501 = vmatprep.subr.mxu1 %v554_v0 }
  0x3c   :  { %430 = vmatpush3.xpose.msk.msra.mxu0 %vm61_vm1, %v49_v14 }
  0x3d   :  { %517 = vmatpush3.xpose.msk.msra.mxu1 %vm61_vm1, %v49_v14  ;;  %431 = vmatprep.subr.mxu0 %v554_v0 }
  0x3e   :  { %502 = vmatprep.subr.mxu1 %v554_v0 }
  0x40   :  { %432 = vmatpush3.xpose.msk.msra.mxu0 %vm61_vm1, %v48_v15 }
  0x41   :  { %518 = vmatpush3.xpose.msk.msra.mxu1 %vm61_vm1, %v48_v15  ;;  %433 = vmatprep.subr.mxu0 %v554_v0 }
  0x42   :  { %503 = vmatprep.subr.mxu1 %v554_v0 }
  0x44   :  { %434 = vmatpush3.xpose.msk.msra.mxu0 %vm61_vm1, %v47_v16 }
  0x45   :  { %519 = vmatpush3.xpose.msk.msra.mxu1 %vm61_vm1, %v47_v16  ;;  %435 = vmatprep.subr.mxu0 %v554_v0 }
  0x46   :  { %504 = vmatprep.subr.mxu1 %v554_v0 }
  0x48   :  { %436 = vmatpush3.xpose.msk.msra.mxu0 %vm61_vm1, %v46_v17 }
  0x49   :  { %520 = vmatpush3.xpose.msk.msra.mxu1 %vm61_vm1, %v46_v17  ;;  %437 = vmatprep.subr.mxu0 %v554_v0 }
  0x4a   :  { %505 = vmatprep.subr.mxu1 %v554_v0 }
  0x4c   :  { %438 = vmatpush3.xpose.msk.msra.mxu0 %vm61_vm1, %v45_v18 }
  0x4d   :  { %521 = vmatpush3.xpose.msk.msra.mxu1 %vm61_vm1, %v45_v18 }
  0x4f   :  { %440 = vmatmul.mubr.msk.f32.vlgmr.msra.gmra.mxu0 %vm61_vm1, %v28_v19 }
  0x50   :  { %467 = vmatmul.mubr.msk.f32.vlgmr.msra.gmra.mxu1 %vm61_vm1, %v37_v20  ;;  %442 = vmatprep.mubr.msk.f32.mxu0 %vm555_vm0, %v554_v0 }
  0x51   :  { %469 = vmatprep.mubr.msk.f32.mxu1 %vm555_vm0, %v554_v0 }
  0x53   :  { %443 = vmatmul.mubr.msk.f32.gmra.mxu0 %vm61_vm1, %v29_v21 }
  0x54   :  { %470 = vmatmul.mubr.msk.f32.gmra.mxu1 %vm61_vm1, %v38_v22  ;;  %445 = vmatprep.mubr.msk.f32.mxu0 %vm555_vm0, %v554_v0 }
  0x55   :  { %472 = vmatprep.mubr.msk.f32.mxu1 %vm555_vm0, %v554_v0 }
  0x57   :  { %446 = vmatmul.mubr.msk.f32.gmra.mxu0 %vm61_vm1, %v30_v23 }
  0x58   :  { %473 = vmatmul.mubr.msk.f32.gmra.mxu1 %vm61_vm1, %v39_v24  ;;  %448 = vmatprep.mubr.msk.f32.mxu0 %vm555_vm0, %v554_v0 }
  0x59   :  { %475 = vmatprep.mubr.msk.f32.mxu1 %vm555_vm0, %v554_v0 }
  0x5b   :  { %449 = vmatmul.mubr.msk.f32.gmra.mxu0 %vm61_vm1, %v31_v25 }
  0x5c   :  { %476 = vmatmul.mubr.msk.f32.gmra.mxu1 %vm61_vm1, %v40_v26  ;;  %451 = vmatprep.mubr.msk.f32.mxu0 %vm555_vm0, %v554_v0 }
  0x5d   :  { %478 = vmatprep.mubr.msk.f32.mxu1 %vm555_vm0, %v554_v0 }
  0x5f   :  { %452 = vmatmul.mubr.msk.f32.gmra.mxu0 %vm61_vm1, %v32_v27 }
  0x60   :  { %479 = vmatmul.mubr.msk.f32.gmra.mxu1 %vm61_vm1, %v41_v28  ;;  %454 = vmatprep.mubr.msk.f32.mxu0 %vm555_vm0, %v554_v0 }
  0x61   :  { %481 = vmatprep.mubr.msk.f32.mxu1 %vm555_vm0, %v554_v0 }
  0x63   :  { %455 = vmatmul.mubr.msk.f32.gmra.mxu0 %vm61_vm1, %v33_v29 }
  0x64   :  { %482 = vmatmul.mubr.msk.f32.gmra.mxu1 %vm61_vm1, %v42_v30  ;;  %457 = vmatprep.mubr.msk.f32.mxu0 %vm555_vm0, %v554_v0 }
  0x65   :  { %484 = vmatprep.mubr.msk.f32.mxu1 %vm555_vm0, %v554_v0 }
  0x67   :  { %458 = vmatmul.mubr.msk.f32.gmra.mxu0 %vm61_vm1, %v34_v31 }
  0x68   :  { %485 = vmatmul.mubr.msk.f32.gmra.mxu1 %vm61_vm1, %v43_v32  ;;  %460 = vmatprep.mubr.msk.f32.mxu0 %vm555_vm0, %v554_v0 }
  0x69   :  { %487 = vmatprep.mubr.msk.f32.mxu1 %vm555_vm0, %v554_v0 }
  0x6b   :  { %461 = vmatmul.mubr.msk.f32.gmra.mxu0 %vm61_vm1, %v35_v33 }
  0x6c   :  { %488 = vmatmul.mubr.msk.f32.gmra.mxu1 %vm61_vm1, %v44_v34  ;;  %463 = vmatprep.mubr.msk.f32.mxu0 %vm555_vm0, %v554_v0 }
  0x6f   :  { %464 = vmatmul.mubr.msk.f32.gmra.mxu0 %vm61_vm1, %v36_v35 }
  0x8d   :  { %v331_v21 = vpop.permute.xlu0 %330 }
 0x10f   :  { %v227_v36 = vpop.f32.mrf.mxu0 }
 0x110   :  { %v272_v37 = vpop.f32.mrf.mxu1 }
 0x111   :  { %v441_v38 = vpop.f32.mrf.mxu0 }
 0x112   :  { %v468_v39 = vpop.f32.mrf.mxu1 }
 0x113   :  { %v232_v40 = vpop.f32.mrf.mxu0 }
 0x114   :  { %v277_v41 = vpop.f32.mrf.mxu1 }
 0x115   :  { %v444_v42 = vpop.f32.mrf.mxu0 }
 0x116   :  { %v471_v43 = vpop.f32.mrf.mxu1 }
 0x117   :  { %v237_v44 = vpop.f32.mrf.mxu0 }
 0x118   :  { %v282_v45 = vpop.f32.mrf.mxu1 }
 0x119   :  { %v447_v46 = vpop.f32.mrf.mxu0 }
 0x11a   :  { %v474_v47 = vpop.f32.mrf.mxu1 }
 0x11b   :  { %v242_v48 = vpop.f32.mrf.mxu0 }
 0x11c   :  { %v287_v49 = vpop.f32.mrf.mxu1 }
 0x11d   :  { %v450_v50 = vpop.f32.mrf.mxu0 }
 0x11e   :  { %v477_v51 = vpop.f32.mrf.mxu1 }
 0x11f   :  { %v247_v52 = vpop.f32.mrf.mxu0 }
 0x120   :  { %v292_v53 = vpop.f32.mrf.mxu1  ;;  %v311_v7 = vmax.f32 %v227_v36, %v247_v52 }
 0x121   :  { %v453_v54 = vpop.f32.mrf.mxu0 }
 0x122   :  { %v480_v55 = vpop.f32.mrf.mxu1 }
 0x123   :  { %v252_v56 = vpop.f32.mrf.mxu0 }
 0x124   :  { %v297_v57 = vpop.f32.mrf.mxu1  ;;  %v312_v2 = vmax.f32 %v232_v40, %v252_v56 }
 0x125   :  { %v456_v58 = vpop.f32.mrf.mxu0 }
 0x126   :  { %v483_v59 = vpop.f32.mrf.mxu1  ;;  %v316_v10 = vmax.f32 %v312_v2, %v272_v37 }
 0x127   :  { %v257_v60 = vpop.f32.mrf.mxu0 }
 0x128   :  { %v302_v61 = vpop.f32.mrf.mxu1  ;;  %v313_v3 = vmax.f32 %v237_v44, %v257_v60  ;;  %v320_v16 = vmax.f32 %v316_v10, %v292_v53 }
 0x129   :  { %v459_v62 = vpop.f32.mrf.mxu0 }
 0x12a   :  { %v486_v63 = vpop.f32.mrf.mxu1  ;;  %v317_v11 = vmax.f32 %v313_v3, %v277_v41 }
 0x12b   :  { %v262_v0 = vpop.f32.mrf.mxu0 }
 0x12c   :  { %v307_v1 = vpop.f32.mrf.mxu1  ;;  %v314_v4 = vmax.f32 %v242_v48, %v262_v0  ;;  %v321_v17 = vmax.f32 %v317_v11, %v297_v57 }
 0x12d   :  { %v462_v5 = vpop.f32.mrf.mxu0 }
 0x12e   :  { %v489_v6 = vpop.f32.mrf.mxu1  ;;  %v318_v8 = vmax.f32 %v314_v4, %v282_v45 }
 0x12f   :  { %v267_v9 = vpop.f32.mrf.mxu0 }
 0x130   :  { %v315_v12 = vmax.f32 %v311_v7, %v267_v9  ;;  %v322_v14 = vmax.f32 %v318_v8, %v302_v61 }
 0x131   :  { %v465_v13 = vpop.f32.mrf.mxu0 }
 0x132   :  { %v319_v15 = vmax.f32 %v315_v12, %v287_v49  ;;  %v325_v19 = vmax.f32 %v321_v17, %v322_v14 }
 0x134   :  { %v323_v18 = vmax.f32 %v319_v15, %v307_v1 }
 0x136   :  { %v324_v20 = vmax.f32 %v323_v18, %v320_v16 }
 0x138   :  { %v326_v22 = vmax.f32 %v324_v20, %v325_v19 }
 0x13a   :  { %v333_v23 = vadd.f32 %v331_v21, %v326_v22 }
 0x13c   :  { %v334_v24 = vmax.f32 %v333_v23, 0.0 }
 0x13e   :  { %335 = vst [vmem:[%s752_s3] sm:$0xff] %v334_v24 }
 0x13f   :  { %340 = vsyncpa [#allocation3], 1 }

</bundles_post_ra>
